<compile_context>
chip_gen: v7x
topology: tpu7x:2x2x1
jax: 0.10.0
libtpu: 0.0.40
codegen_flags: <defaults>
</compile_context>

<pallas_src>
import functools
import math

import jax
import jax.numpy as jnp
from jax.experimental import pallas as pl
from jax.experimental.pallas import tpu as pltpu

LANES = 128
CHUNK_ROWS = 512                 # rows per in-kernel accumulation chunk (512x128 f32 = 256 KiB)
TARGET_TILE_BYTES = 4 << 20      # ~4 MiB per input tile buffer (x2 inputs x2 buffers = 16 MiB)
VMEM_LIMIT_BYTES = 32 * 1024 * 1024


def _round_up(x, m):
    return ((x + m - 1) // m) * m


def _kd_loss_kernel(*refs, block_rows, chunk_rows, static_inv_t):
    """One grid step: partial BCE-with-logits sums for a (block_rows, 128) tile.

    Writes one lane-dense (8, 128) f32 vreg of partial sums per block; the tiny
    cross-block / cross-lane combine happens once in the wrapper.
    """
    if static_inv_t is None:
        inv_t_ref, nrows_ref, teacher_ref, student_ref, out_ref = refs
        inv_t = inv_t_ref[0]
    else:
        nrows_ref, teacher_ref, student_ref, out_ref = refs
        inv_t = jnp.float32(static_inv_t)

    i = pl.program_id(0)
    block_start = i * block_rows
    num_chunks = block_rows // chunk_rows

    def chunk_partial(c, mask_rows):
        r0 = pl.multiple_of(c * chunk_rows, chunk_rows)
        x = student_ref[pl.ds(r0, chunk_rows), :].astype(jnp.float32) * inv_t
        y = teacher_ref[pl.ds(r0, chunk_rows), :].astype(jnp.float32) * inv_t
        # sigmoid(y) == 0.5 * tanh(y / 2) + 0.5  -> one EUP push for the soft target.
        z = 0.5 * jnp.tanh(0.5 * y) + 0.5
        # Numerically-stable BCE with logits (torch semantics):
        #   loss = max(x, 0) - x*z + log1p(exp(-|x|))
        loss = jnp.maximum(x, 0.0) - x * z + jnp.log1p(jnp.exp(-jnp.abs(x)))
        if mask_rows:
            # Ragged tail: drop garbage / OOB rows with a true select (NaN-safe).
            valid = nrows_ref[0] - block_start - r0
            row_ids = jax.lax.broadcasted_iota(jnp.int32, (chunk_rows, LANES), 0)
            loss = jnp.where(row_ids < valid, loss, 0.0)
        # Fold the chunk down to a single (8, 128) vreg of partial sums (pure VPU adds).
        return loss.reshape(chunk_rows // 8, 8, LANES).sum(axis=0)

    def run(mask_rows):
        def body(c, acc):
            return acc + chunk_partial(c, mask_rows)
        out_ref[...] = jax.lax.fori_loop(
            0, num_chunks, body, jnp.zeros((8, LANES), jnp.float32), unroll=True)

    needs_mask = block_start + block_rows > nrows_ref[0]

    # Hot path: interior blocks have zero mask work.
    @pl.when(jnp.logical_not(needs_mask))
    def _():
        run(False)

    # Ragged tail block only.
    @pl.when(needs_mask)
    def _():
        run(True)


def kd_loss(logits_teacher, logits_student, temperature):
    """JAX/Pallas equivalent of KDLoss.forward (BCE-with-logits, reduction='mean')."""
    assert logits_teacher.shape == logits_student.shape
    n = logits_teacher.size
    dt_bytes = jnp.dtype(logits_teacher.dtype).itemsize

    t_flat = logits_teacher.reshape(-1)     # native dtype; widened per-tile in VMEM
    s_flat = logits_student.reshape(-1)

    # Minimal zero-pad (<128 elements) only if needed to reshape to (rows, 128).
    pad = (-n) % LANES
    if pad:
        t_flat = jnp.pad(t_flat, (0, pad))
        s_flat = jnp.pad(s_flat, (0, pad))
    rows = (n + pad) // LANES

    # ---- block-size selection (HBM-streaming bound; amortize ~0.35us/step) --------
    packing = max(8, 32 // dt_bytes)                  # sublane packing: 8 f32 / 16 bf16 / 32 i8
    target_rows = TARGET_TILE_BYTES // (LANES * dt_bytes)

    block_rows = min(target_rows, _round_up(rows, packing))
    # Keep >= 2 grid steps when there is enough work so both v7x TensorCores get blocks
    # (costs at most one extra ~0.35us step on single-TC chips).
    if rows >= 2 * CHUNK_ROWS:
        block_rows = min(block_rows, _round_up(pl.cdiv(rows, 2), CHUNK_ROWS))
    if block_rows > CHUNK_ROWS:
        block_rows = _round_up(block_rows, CHUNK_ROWS)   # chunk loop divides evenly
        chunk_rows = CHUNK_ROWS
    else:
        block_rows = _round_up(block_rows, packing)
        chunk_rows = block_rows
    num_blocks = pl.cdiv(rows, block_rows)

    t2 = t_flat.reshape(rows, LANES)
    s2 = s_flat.reshape(rows, LANES)
    nrows = jnp.asarray([rows], jnp.int32)

    # Bake 1/T as a compile-time constant when possible (drops one SMEM operand).
    if isinstance(temperature, (int, float)):
        static_inv_t = 1.0 / float(temperature)
    else:
        static_inv_t = None

    kernel = functools.partial(_kd_loss_kernel, block_rows=block_rows,
                               chunk_rows=chunk_rows, static_inv_t=static_inv_t)

    operands = [nrows, t2, s2]
    in_specs = [
        pl.BlockSpec(memory_space=pltpu.MemorySpace.SMEM),        # valid rows
        pl.BlockSpec((block_rows, LANES), lambda i: (i, 0)),      # teacher tile
        pl.BlockSpec((block_rows, LANES), lambda i: (i, 0)),      # student tile
    ]
    if static_inv_t is None:
        inv_t = (1.0 / jnp.asarray(temperature, jnp.float32)).reshape(1)
        operands.insert(0, inv_t)
        in_specs.insert(0, pl.BlockSpec(memory_space=pltpu.MemorySpace.SMEM))

    partials = pl.pallas_call(
        kernel,
        out_shape=jax.ShapeDtypeStruct((num_blocks * 8, LANES), jnp.float32),
        grid=(num_blocks,),
        in_specs=in_specs,
        out_specs=pl.BlockSpec((8, LANES), lambda i: (i, 0)),
        compiler_params=pltpu.CompilerParams(
            dimension_semantics=("parallel",),     # independent blocks -> v7x megacore
            vmem_limit_bytes=VMEM_LIMIT_BYTES,     # 16 MiB of double-buffered inputs needs > v5e's 16 MiB default
        ),
        cost_estimate=pl.CostEstimate(
            flops=6 * n,
            transcendentals=3 * n,
            bytes_accessed=2 * n * dt_bytes + num_blocks * 8 * LANES * 4,
        ),
    )(*operands)

    total = jnp.sum(partials, dtype=jnp.float32)
    if pad:
        # Each zero-padded element (x = 0, z = 0.5) contributes exactly ln(2).
        total = total - jnp.float32(pad) * jnp.float32(math.log(2.0))
    return total / jnp.float32(n)


def _kd_loss_ref(logits_teacher, logits_student, temperature):
    x = logits_student.astype(jnp.float32) / temperature
    z = jax.nn.sigmoid(logits_teacher.astype(jnp.float32) / temperature)
    loss = jnp.maximum(x, 0.0) - x * z + jnp.log1p(jnp.exp(-jnp.abs(x)))
    return jnp.mean(loss)


if __name__ == "__main__":
    key = jax.random.PRNGKey(0)
    k_t, k_s = jax.random.split(key)

    # Small NCHW logits, consistent with a dense-prediction KD setting.
    shape = (2, 4, 16, 16)
    logits_teacher = jax.random.normal(k_t, shape, dtype=jnp.float32) * 2.0
    logits_student = jax.random.normal(k_s, shape, dtype=jnp.float32) * 2.0
    temperature = 4.0

    out = kd_loss(logits_teacher, logits_student, temperature)
    out = jax.block_until_ready(out)
    ref = _kd_loss_ref(logits_teacher, logits_student, temperature)
    assert jnp.allclose(out, ref, rtol=1e-5, atol=1e-6), (out, ref)

    # Ragged case: numel not a multiple of 128 exercises the tail mask + ln(2) fixup.
    shape2 = (3, 5, 7, 11)
    k_t2, k_s2 = jax.random.split(jax.random.PRNGKey(1))
    t2 = jax.random.normal(k_t2, shape2, dtype=jnp.float32) * 2.0
    s2 = jax.random.normal(k_s2, shape2, dtype=jnp.float32) * 2.0
    out2 = jax.block_until_ready(kd_loss(t2, s2, 2.0))
    ref2 = _kd_loss_ref(t2, s2, 2.0)
    assert jnp.allclose(out2, ref2, rtol=1e-5, atol=1e-6), (out2, ref2)

    # Multi-block case (rows = 1024 -> two 512-row blocks) exercises the chunked
    # accumulation and the >=2-blocks split used for v7x megacore.
    shape3 = (4, 8, 64, 64)
    k_t3, k_s3 = jax.random.split(jax.random.PRNGKey(2))
    t3 = jax.random.normal(k_t3, shape3, dtype=jnp.float32) * 2.0
    s3 = jax.random.normal(k_s3, shape3, dtype=jnp.float32) * 2.0
    out3 = jax.block_until_ready(kd_loss(t3, s3, 3.0))
    ref3 = _kd_loss_ref(t3, s3, 3.0)
    assert jnp.allclose(out3, ref3, rtol=1e-5, atol=1e-6), (out3, ref3)

    print("KERNEL_OK")
</pallas_src>

<mosaic_0001>
module attributes {stable_mosaic.version = 11 : i64} {
  func.func @_kd_loss_kernel(%arg0: i32, %arg1: memref<1xi32, #tpu.memory_space<smem>>, %arg2: memref<16x128xf32, #tpu.memory_space<vmem>>, %arg3: memref<16x128xf32, #tpu.memory_space<vmem>>, %arg4: memref<8x128xf32, #tpu.memory_space<vmem>>) attributes {dimension_semantics = [#tpu.dimension_semantics<parallel>], iteration_bounds = array<i64: 1>, scalar_prefetch = 0 : i64, scratch_operands = 0 : i64, tpu.core_type = #tpu.core_type<tc>, window_params = [{transform_indices = @transform_0, window_bounds = array<i64: 1>}, {transform_indices = @transform_1, window_bounds = array<i64: 16, 128>}, {transform_indices = @transform_2, window_bounds = array<i64: 16, 128>}, {transform_indices = @transform_3, window_bounds = array<i64: 8, 128>}]} {
    %c16_i32 = arith.constant 16 : i32
    %0 = arith.muli %arg0, %c16_i32 : i32
    %c16_i32_0 = arith.constant 16 : i32
    %1 = arith.addi %0, %c16_i32_0 : i32
    %c0 = arith.constant 0 : index
    %2 = memref.load %arg1[%c0] : memref<1xi32, #tpu.memory_space<smem>>
    %3 = arith.cmpi sgt, %1, %2 : i32
    %true = arith.constant true
    %4 = arith.xori %3, %true : i1
    %5 = arith.extui %4 : i1 to i32
    %cst = arith.constant 2.500000e-01 : f32
    %c0_i32 = arith.constant 0 : i32
    %6 = arith.cmpi ne, %5, %c0_i32 : i32
    scf.if %6 {
      %cst_3 = arith.constant 0.000000e+00 : f32
      %9 = vector.broadcast %cst_3 : f32 to vector<8x128xf32>
      %c0_i32_4 = arith.constant 0 : i32
      %c16_i32_5 = arith.constant 16 : i32
      %10 = arith.muli %c0_i32_4, %c16_i32_5 : i32
      %11 = tpu.assume_multiple %10, 16 : i32
      %12 = arith.index_cast %11 : i32 to index
      %c0_6 = arith.constant 0 : index
      %13 = vector.load %arg3[%12, %c0_6] : memref<16x128xf32, #tpu.memory_space<vmem>>, vector<16x128xf32>
      %14 = vector.broadcast %cst : f32 to vector<16x128xf32>
      %15 = arith.mulf %13, %14 : vector<16x128xf32>
      %16 = arith.index_cast %11 : i32 to index
      %c0_7 = arith.constant 0 : index
      %17 = vector.load %arg2[%16, %c0_7] : memref<16x128xf32, #tpu.memory_space<vmem>>, vector<16x128xf32>
      %18 = vector.broadcast %cst : f32 to vector<16x128xf32>
      %19 = arith.mulf %17, %18 : vector<16x128xf32>
      %cst_8 = arith.constant 5.000000e-01 : f32
      %20 = vector.broadcast %cst_8 : f32 to vector<16x128xf32>
      %21 = arith.mulf %20, %19 : vector<16x128xf32>
      %22 = math.tanh %21 : vector<16x128xf32>
      %cst_9 = arith.constant 5.000000e-01 : f32
      %23 = vector.broadcast %cst_9 : f32 to vector<16x128xf32>
      %24 = arith.mulf %23, %22 : vector<16x128xf32>
      %cst_10 = arith.constant 5.000000e-01 : f32
      %25 = vector.broadcast %cst_10 : f32 to vector<16x128xf32>
      %26 = arith.addf %24, %25 : vector<16x128xf32>
      %cst_11 = arith.constant 0.000000e+00 : f32
      %27 = vector.broadcast %cst_11 : f32 to vector<16x128xf32>
      %28 = arith.maximumf %15, %27 : vector<16x128xf32>
      %29 = arith.mulf %15, %26 : vector<16x128xf32>
      %30 = arith.subf %28, %29 : vector<16x128xf32>
      %31 = math.absf %15 : vector<16x128xf32>
      %cst_12 = arith.constant 0.000000e+00 : f32
      %32 = vector.broadcast %cst_12 : f32 to vector<16x128xf32>
      %33 = arith.subf %32, %31 : vector<16x128xf32>
      %34 = math.exp %33 : vector<16x128xf32>
      %35 = math.log1p %34 : vector<16x128xf32>
      %36 = arith.addf %30, %35 : vector<16x128xf32>
      %37 = vector.shape_cast %36 : vector<16x128xf32> to vector<2x8x128xf32>
      %cst_13 = arith.constant dense<0.000000e+00> : vector<8x128xf32>
      %38 = vector.multi_reduction <add>, %37, %cst_13 [0] : vector<2x8x128xf32> to vector<8x128xf32>
      %39 = arith.addf %9, %38 : vector<8x128xf32>
      %c1_i32 = arith.constant 1 : i32
      %c0_14 = arith.constant 0 : index
      %c0_15 = arith.constant 0 : index
      %40 = vector.load %arg4[%c0_14, %c0_15] : memref<8x128xf32, #tpu.memory_space<vmem>>, vector<8x128xf32>
      tpu.vector_store %arg4[%c0_14, %c0_15], %39 {strides = array<i32>} : memref<8x128xf32, #tpu.memory_space<vmem>>, vector<8x128xf32>,
    } else {
    }
    %7 = arith.extui %3 : i1 to i32
    %cst_1 = arith.constant 2.500000e-01 : f32
    %c0_i32_2 = arith.constant 0 : i32
    %8 = arith.cmpi ne, %7, %c0_i32_2 : i32
    scf.if %8 {
      %cst_3 = arith.constant 0.000000e+00 : f32
      %9 = vector.broadcast %cst_3 : f32 to vector<8x128xf32>
      %c0_i32_4 = arith.constant 0 : i32
      %c16_i32_5 = arith.constant 16 : i32
      %10 = arith.muli %c0_i32_4, %c16_i32_5 : i32
      %11 = tpu.assume_multiple %10, 16 : i32
      %12 = arith.index_cast %11 : i32 to index
      %c0_6 = arith.constant 0 : index
      %13 = vector.load %arg3[%12, %c0_6] : memref<16x128xf32, #tpu.memory_space<vmem>>, vector<16x128xf32>
      %14 = vector.broadcast %cst_1 : f32 to vector<16x128xf32>
      %15 = arith.mulf %13, %14 : vector<16x128xf32>
      %16 = arith.index_cast %11 : i32 to index
      %c0_7 = arith.constant 0 : index
      %17 = vector.load %arg2[%16, %c0_7] : memref<16x128xf32, #tpu.memory_space<vmem>>, vector<16x128xf32>
      %18 = vector.broadcast %cst_1 : f32 to vector<16x128xf32>
      %19 = arith.mulf %17, %18 : vector<16x128xf32>
      %cst_8 = arith.constant 5.000000e-01 : f32
      %20 = vector.broadcast %cst_8 : f32 to vector<16x128xf32>
      %21 = arith.mulf %20, %19 : vector<16x128xf32>
      %22 = math.tanh %21 : vector<16x128xf32>
      %cst_9 = arith.constant 5.000000e-01 : f32
      %23 = vector.broadcast %cst_9 : f32 to vector<16x128xf32>
      %24 = arith.mulf %23, %22 : vector<16x128xf32>
      %cst_10 = arith.constant 5.000000e-01 : f32
      %25 = vector.broadcast %cst_10 : f32 to vector<16x128xf32>
      %26 = arith.addf %24, %25 : vector<16x128xf32>
      %cst_11 = arith.constant 0.000000e+00 : f32
      %27 = vector.broadcast %cst_11 : f32 to vector<16x128xf32>
      %28 = arith.maximumf %15, %27 : vector<16x128xf32>
      %29 = arith.mulf %15, %26 : vector<16x128xf32>
      %30 = arith.subf %28, %29 : vector<16x128xf32>
      %31 = math.absf %15 : vector<16x128xf32>
      %cst_12 = arith.constant 0.000000e+00 : f32
      %32 = vector.broadcast %cst_12 : f32 to vector<16x128xf32>
      %33 = arith.subf %32, %31 : vector<16x128xf32>
      %34 = math.exp %33 : vector<16x128xf32>
      %35 = math.log1p %34 : vector<16x128xf32>
      %36 = arith.addf %30, %35 : vector<16x128xf32>
      %c0_13 = arith.constant 0 : index
      %37 = memref.load %arg1[%c0_13] : memref<1xi32, #tpu.memory_space<smem>>
      %38 = arith.subi %37, %0 : i32
      %39 = arith.subi %38, %11 : i32
      %40 = tpu.iota {dimensions = array<i32: 0>} : vector<16x128xi32>
      %41 = vector.broadcast %39 : i32 to vector<16x128xi32>
      %42 = arith.cmpi slt, %40, %41 : vector<16x128xi32>
      %cst_14 = arith.constant 0.000000e+00 : f32
      %43 = vector.broadcast %cst_14 : f32 to vector<16x128xf32>
      %44 = arith.select %42, %36, %43 : vector<16x128xi1>, vector<16x128xf32>
      %45 = vector.shape_cast %44 : vector<16x128xf32> to vector<2x8x128xf32>
      %cst_15 = arith.constant dense<0.000000e+00> : vector<8x128xf32>
      %46 = vector.multi_reduction <add>, %45, %cst_15 [0] : vector<2x8x128xf32> to vector<8x128xf32>
      %47 = arith.addf %9, %46 : vector<8x128xf32>
      %c1_i32 = arith.constant 1 : i32
      %c0_16 = arith.constant 0 : index
      %c0_17 = arith.constant 0 : index
      %48 = vector.load %arg4[%c0_16, %c0_17] : memref<8x128xf32, #tpu.memory_space<vmem>>, vector<8x128xf32>
      tpu.vector_store %arg4[%c0_16, %c0_17], %47 {strides = array<i32>} : memref<8x128xf32, #tpu.memory_space<vmem>>, vector<8x128xf32>,
    } else {
    }
    return
  }
  func.func @transform_0(%arg0: i32) -> i32 {
    %c0_i32 = arith.constant 0 : i32
    %c0_i32_0 = arith.constant 0 : i32
    return %c0_i32 : i32
  }
  func.func @transform_1(%arg0: i32) -> (i32, i32) {
    %c0_i32 = arith.constant 0 : i32
    %c0_i32_0 = arith.constant 0 : i32
    return %arg0, %c0_i32 : i32, i32
  }
  func.func @transform_2(%arg0: i32) -> (i32, i32) {
    %c0_i32 = arith.constant 0 : i32
    %c0_i32_0 = arith.constant 0 : i32
    return %arg0, %c0_i32 : i32, i32
  }
  func.func @transform_3(%arg0: i32) -> (i32, i32) {
    %c0_i32 = arith.constant 0 : i32
    %c0_i32_0 = arith.constant 0 : i32
    return %arg0, %c0_i32 : i32, i32
  }
}

</mosaic_0001>

<bundles_post_ra>
// kernel: tpu_custom_call.1
= control target key start
LH: loop header
LB: loop body
LE: loop exit
PB: predicated region body
PF: predicated region fallthrough
CT: control target
= control target key end

     0   :  { %s361_s0 = inlined_call_operand.<no memory space> [shape: s32[1], index: 0, kind: input, shape index: {}]   ;;  %s362_s1 = inlined_call_operand.hbm [shape: f32[16,128], index: 1, kind: input, shape index: {}]   ;;  %s363_s2 = inlined_call_operand.hbm [shape: f32[16,128], index: 2, kind: input, shape index: {}]   ;;  %s364_s3 = inlined_call_operand.hbm [shape: f32[8,128], index: 3, kind: output, shape index: {}]  }
   0x1   :  { %8 = sst [smem:[#allocation2]] %s361_s0 }
   0x2   :  { %9 = vsyncpa [#allocation4], 0 }
   0x3   :  { %10 = vsyncpa [#allocation7], 0 }
   0x4   :  { %11 = vsyncpa [#allocation5], 0  ;;  %s293_s14 = smov [#allocation3]   ;;  %s221_s18 = scalar_lea.hbm %s362_s1, 256 }
   0x5   :  { %s19_s15 = sshll.u32 %s293_s14, 4  ;;  %p222_p0 = scmp.ne.s32.totalorder %s362_s1, %s221_s18  ;;  %s20_s15 = int_to_ptr.vmem [resolvable:$true] %s19_s15 }
   0x6   :  { %p225_p1 = scmp.lt.u32.totalorder %s221_s18, %s362_s1 }
   0x8   :  { %p227_p2 = pnand %p225_p1, %p222_p0 }
   0xa   :  { %230 = shalt.err (!%p227_p2)
}
   0xb   :  { %s231_s0 = scalar_lea.vmem %s20_s15, 256  ;;  %p236_p4 = scmp.lt.s32.totalorder %s20_s15, %s20_s15 }
   0xc   :  { %p232_p3 = scmp.ne.s32.totalorder %s20_s15, %s231_s0  ;;  %p237_p5 = scmp.lt.s32.totalorder %s231_s0, %s231_s0 }
   0xe   :  { %p238_p6 = por %p237_p5, %p236_p4 }
  0x10   :  { %p239_p7 = pnand %p238_p6, %p232_p3 }
  0x12   :  { %242 = shalt.err (!%p239_p7)
}
  0x13   :  { %s294_s23 = smov 128   ;;  %s295_s24 = smov 8  }
  0x14   :  { %25 = dma.hbm_to_vmem [thread:$0]  %s362_s1, 256, %s20_s15, [#allocation4], %s294_s23, %s294_s23, %s295_s24  }
  0x15   :  { %s296_s27 = smov [#allocation6]   ;;  %s243_s4 = scalar_lea.hbm %s363_s2, 256 }
  0x16   :  { %s31_s28 = sshll.u32 %s296_s27, 4  ;;  %p244_p8 = scmp.ne.s32.totalorder %s363_s2, %s243_s4  ;;  %s32_s28 = int_to_ptr.vmem [resolvable:$true] %s31_s28 }
  0x17   :  { %p247_p9 = scmp.lt.u32.totalorder %s243_s4, %s363_s2 }
  0x19   :  { %p249_p10 = pnand %p247_p9, %p244_p8 }
  0x1b   :  { %252 = shalt.err (!%p249_p10)
}
  0x1c   :  { %s253_s9 = scalar_lea.vmem %s32_s28, 256  ;;  %p258_p12 = scmp.lt.s32.totalorder %s32_s28, %s32_s28 }
  0x1d   :  { %p254_p11 = scmp.ne.s32.totalorder %s32_s28, %s253_s9  ;;  %p259_p13 = scmp.lt.s32.totalorder %s253_s9, %s253_s9 }
  0x1f   :  { %p260_p0 = por %p259_p13, %p258_p12 }
  0x21   :  { %p261_p1 = pnand %p260_p0, %p254_p11 }
  0x23   :  { %264 = shalt.err (!%p261_p1)
}
  0x24   :  { %37 = dma.hbm_to_vmem [thread:$0]  %s363_s2, 256, %s32_s28, [#allocation7], %s294_s23, %s294_s23, %s295_s24  }
  0x25   :  { %287 = dma.done.wait [#allocation4], 256  }
  0x26   :  { %288 = vsyncadd [#allocation4], 4294967040 }
  0x27   :  { %289 = dma.done.wait [#allocation7], 256  }
  0x28   :  { %290 = vsyncadd [#allocation7], 4294967040  ;;  %s345_s11 = sld [smem:[#allocation2]] }
  0x2e   :  { %p190_p2 = scmp.lt.s32.totalorder %s345_s11, 16 }
  0x2f   :  { %v52_v0 = vld [vmem:[#allocation6] sm:$0xff] (!%p190_p2)  ;;  %v53_v1 = vld [vmem:[#allocation6 + $0x8] sm:$0xff] (!%p190_p2)  ;;  %v56_v2 = vld [vmem:[#allocation3] sm:$0xff] (!%p190_p2) }
  0x30   :  { %51 = sbr.rel (%p190_p2) target bundleno = 89 (0x59), region = 25  ;;  %v54_v3 = vmul.f32 (!%p190_p2), 0.25, %v52_v0  ;;  %v55_v4 = vmul.f32 (!%p190_p2), 0.25, %v53_v1  ;;  %v57_v5 = vld [vmem:[#allocation3 + $0x8] sm:$0xff] (!%p190_p2)  ;;  %v58_v6 = vmul.f32 (!%p190_p2), 0.25, %v56_v2 }
  0x31   :  { %v59_v7 = vmul.f32 (!%p190_p2), 0.25, %v57_v5 }
  0x32   :  { %v60_v8 = vmul.f32 (!%p190_p2), 0.5, %v58_v6  ;;  %v74_v9 = vand.u32 (!%p190_p2), 2147483647, %v54_v3  ;;  %v75_v11 = vand.u32 (!%p190_p2), 2147483647, %v55_v4  ;;  %v68_v29 = vmax.f32 (!%p190_p2), %v54_v3, 0.0 }
  0x33   :  { %v61_v10 = vmul.f32 (!%p190_p2), 0.5, %v59_v7  ;;  %v69_v33 = vmax.f32 (!%p190_p2), %v55_v4, 0.0 }
  0x34   :  { %v76_v12 = vsub.f32 (!%p190_p2), 0.0, %v74_v9  ;;  %v77_v13 = vsub.f32 (!%p190_p2), 0.0, %v75_v11  ;;  %197 = vtanh.f32 (!%p190_p2), %v60_v8 }
  0x35   :  { %199 = vtanh.f32 (!%p190_p2), %v61_v10 }
  0x36   :  { %v78_v14 = vmul.f32 (!%p190_p2), 1.442695, %v76_v12  ;;  %v80_v15 = vmul.f32 (!%p190_p2), 1.442695, %v77_v13 }
  0x38   :  { %201 = vpow2.f32 %v78_v14 }
  0x39   :  { %203 = vpow2.f32 %v80_v15 }
  0x3e   :  { %v198_v16 = vpop.eup %197 }
  0x3f   :  { %v200_v17 = vpop.eup %199  ;;  %v64_v20 = vmul.f32 0.5, %v198_v16 }
  0x40   :  { %v65_v22 = vmul.f32 0.5, %v200_v17 }
  0x41   :  { %v66_v25 = vadd.f32 0.5, %v64_v20 }
  0x42   :  { %v202_v18 = vpop.eup %201  ;;  %v67_v27 = vadd.f32 0.5, %v65_v22 }
  0x43   :  { %v204_v19 = vpop.eup %203  ;;  %v82_v21 = vadd.f32 1.0, %v202_v18  ;;  %v85_v24 = vmul.f32 -0.5, %v202_v18  ;;  %v70_v30 = vmul.f32 %v66_v25, %v54_v3  ;;  %v88_v31 = vand.u32 2147483647, %v202_v18 }
  0x44   :  { %v91_v23 = vadd.f32 1.0, %v204_v19  ;;  %v94_v26 = vmul.f32 -0.5, %v204_v19  ;;  %v71_v34 = vmul.f32 %v67_v27, %v55_v4  ;;  %v97_v35 = vand.u32 2147483647, %v204_v19 }
  0x45   :  { %205 = vlog2.f32 %v82_v21  ;;  %v86_v28 = vadd.f32 1.0, %v85_v24  ;;  %v72_v38 = vsub.f32 %v68_v29, %v70_v30  ;;  %vm89_vm0 = vcmp.lt.f32.partialorder %v88_v31, 0.0004427343 }
  0x46   :  { %207 = vlog2.f32 %v91_v23  ;;  %v95_v32 = vadd.f32 1.0, %v94_v26  ;;  %v73_v41 = vsub.f32 %v69_v33, %v71_v34  ;;  %vm98_vm1 = vcmp.lt.f32.partialorder %v97_v35, 0.0004427343 }
  0x47   :  { %v87_v36 = vmul.f32 %v202_v18, %v86_v28 }
  0x48   :  { %v96_v39 = vmul.f32 %v204_v19, %v95_v32 }
  0x4f   :  { %v206_v37 = vpop.eup %205 }
  0x50   :  { %v208_v40 = vpop.eup %207  ;;  %v84_v42 = vmul.f32 0.6931472, %v206_v37 }
  0x51   :  { %v93_v43 = vmul.f32 0.6931472, %v208_v40 }
  0x52   :  { %v90_v44 = vsel %vm89_vm0, %v87_v36, %v84_v42 }
  0x53   :  { %v99_v45 = vsel %vm98_vm1, %v96_v39, %v93_v43  ;;  %v100_v46 = vadd.f32 %v90_v44, %v72_v38 }
  0x54   :  { %v101_v47 = vadd.f32 %v99_v45, %v73_v41 }
  0x56   :  { %v102_v48 = vadd.f32 %v101_v47, %v100_v46 }
  0x58   :  { %104 = vst [vmem:[#allocation8] sm:$0xff] %v102_v48 }
  0x59 PF:  { %p191_p3 = scmp.ge.s32.totalorder %s345_s11, 16 }
  0x5a   :  { %v108_v49 = vld [vmem:[#allocation6] sm:$0xff] (!%p191_p3)  ;;  %v109_v50 = vld [vmem:[#allocation6 + $0x8] sm:$0xff] (!%p191_p3)  ;;  %v112_v51 = vld [vmem:[#allocation3] sm:$0xff] (!%p191_p3)  ;;  %v161_v10 = vlaneseq (!%p191_p3)  ;;  %s158_s2 = sld [smem:[#allocation2]] (!%p191_p3) }
  0x5b   :  { %107 = sbr.rel (%p191_p3) target bundleno = 133 (0x85), region = 29  ;;  %v110_v52 = vmul.f32 (!%p191_p3), 0.25, %v108_v49  ;;  %v111_v53 = vmul.f32 (!%p191_p3), 0.25, %v109_v50  ;;  %v113_v54 = vld [vmem:[#allocation3 + $0x8] sm:$0xff] (!%p191_p3)  ;;  %v114_v55 = vmul.f32 (!%p191_p3), 0.25, %v112_v51 }
  0x5c   :  { %v115_v56 = vmul.f32 (!%p191_p3), 0.25, %v113_v54  ;;  %v162_v15 = vshrl.u32 (!%p191_p3), %v161_v10, 7 }
  0x5d   :  { %v116_v57 = vmul.f32 (!%p191_p3), 0.5, %v114_v55  ;;  %v130_v58 = vand.u32 (!%p191_p3), 2147483647, %v110_v52  ;;  %v131_v60 = vand.u32 (!%p191_p3), 2147483647, %v111_v53  ;;  %v124_v16 = vmax.f32 (!%p191_p3), %v110_v52, 0.0 }
  0x5e   :  { %v117_v59 = vmul.f32 (!%p191_p3), 0.5, %v115_v56  ;;  %v125_v20 = vmax.f32 (!%p191_p3), %v111_v53, 0.0  ;;  %v163_v24 = vadd.s32 (!%p191_p3), 8, %v162_v15 }
  0x5f   :  { %v132_v61 = vsub.f32 (!%p191_p3), 0.0, %v130_v58  ;;  %v133_v62 = vsub.f32 (!%p191_p3), 0.0, %v131_v60  ;;  %209 = vtanh.f32 (!%p191_p3), %v116_v57 }
  0x60   :  { %211 = vtanh.f32 (!%p191_p3), %v117_v59  ;;  %v164_v28 = vstv (!%p191_p3), %s158_s2 }
  0x61   :  { %v134_v63 = vmul.f32 (!%p191_p3), 1.442695, %v132_v61  ;;  %v136_v0 = vmul.f32 (!%p191_p3), 1.442695, %v133_v62  ;;  %vm165_vm4 = vcmp.lt.s32.totalorder (!%p191_p3), %v162_v15, %v164_v28  ;;  %vm166_vm5 = vcmp.lt.s32.totalorder (!%p191_p3), %v163_v24, %v164_v28 }
  0x63   :  { %213 = vpow2.f32 %v134_v63 }
  0x64   :  { %215 = vpow2.f32 %v136_v0 }
  0x69   :  { %v210_v1 = vpop.eup %209 }
  0x6a   :  { %v212_v2 = vpop.eup %211  ;;  %v120_v5 = vmul.f32 0.5, %v210_v1 }
  0x6b   :  { %v121_v7 = vmul.f32 0.5, %v212_v2 }
  0x6c   :  { %v122_v11 = vadd.f32 0.5, %v120_v5 }
  0x6d   :  { %v214_v3 = vpop.eup %213  ;;  %v123_v13 = vadd.f32 0.5, %v121_v7 }
  0x6e   :  { %v216_v4 = vpop.eup %215  ;;  %v138_v6 = vadd.f32 1.0, %v214_v3  ;;  %v141_v9 = vmul.f32 -0.5, %v214_v3  ;;  %v126_v17 = vmul.f32 %v122_v11, %v110_v52  ;;  %v144_v18 = vand.u32 2147483647, %v214_v3 }
  0x6f   :  { %v147_v8 = vadd.f32 1.0, %v216_v4  ;;  %v150_v12 = vmul.f32 -0.5, %v216_v4  ;;  %v127_v21 = vmul.f32 %v123_v13, %v111_v53  ;;  %v153_v22 = vand.u32 2147483647, %v216_v4 }
  0x70   :  { %217 = vlog2.f32 %v138_v6  ;;  %v142_v14 = vadd.f32 1.0, %v141_v9  ;;  %v128_v26 = vsub.f32 %v124_v16, %v126_v17  ;;  %vm145_vm2 = vcmp.lt.f32.partialorder %v144_v18, 0.0004427343 }
  0x71   :  { %219 = vlog2.f32 %v147_v8  ;;  %v151_v19 = vadd.f32 1.0, %v150_v12  ;;  %v129_v30 = vsub.f32 %v125_v20, %v127_v21  ;;  %vm154_vm3 = vcmp.lt.f32.partialorder %v153_v22, 0.0004427343 }
  0x72   :  { %v143_v23 = vmul.f32 %v214_v3, %v142_v14 }
  0x73   :  { %v152_v27 = vmul.f32 %v216_v4, %v151_v19 }
  0x7a   :  { %v218_v25 = vpop.eup %217 }
  0x7b   :  { %v220_v29 = vpop.eup %219  ;;  %v140_v31 = vmul.f32 0.6931472, %v218_v25 }
  0x7c   :  { %v149_v32 = vmul.f32 0.6931472, %v220_v29 }
  0x7d   :  { %v146_v33 = vsel %vm145_vm2, %v143_v23, %v140_v31 }
  0x7e   :  { %v155_v34 = vsel %vm154_vm3, %v152_v27, %v149_v32  ;;  %v156_v35 = vadd.f32 %v146_v33, %v128_v26 }
  0x7f   :  { %v157_v36 = vadd.f32 %v155_v34, %v129_v30 }
  0x80   :  { %v167_v37 = vsel %vm165_vm4, %v156_v35, 0.0 }
  0x81   :  { %v168_v38 = vsel %vm166_vm5, %v157_v36, 0.0 }
  0x82   :  { %v169_v39 = vadd.f32 %v168_v38, %v167_v37 }
  0x84   :  { %171 = vst [vmem:[#allocation8] sm:$0xff] %v169_v39 }
  0x85 PF:  { %s297_s12 = smov [#allocation8]  }
  0x86   :  { %s178_s13 = sshll.u32 %s297_s12, 4  ;;  %s179_s13 = int_to_ptr.vmem [resolvable:$true] %s178_s13 }
  0x87   :  { %s265_s14 = scalar_lea.vmem %s179_s13, 128  ;;  %p270_p5 = scmp.lt.s32.totalorder %s179_s13, %s179_s13 }
  0x88   :  { %p266_p4 = scmp.ne.s32.totalorder %s179_s13, %s265_s14  ;;  %p271_p6 = scmp.lt.s32.totalorder %s265_s14, %s265_s14 }
  0x8a   :  { %p272_p7 = por %p271_p6, %p270_p5 }
  0x8c   :  { %p273_p8 = pnand %p272_p7, %p266_p4 }
  0x8e   :  { %276 = shalt.err (!%p273_p8)
}
  0x8f   :  { %s277_s17 = scalar_lea.hbm %s364_s3, 128 }
  0x90   :  { %p278_p9 = scmp.ne.s32.totalorder %s364_s3, %s277_s17  ;;  %p281_p10 = scmp.lt.u32.totalorder %s277_s17, %s364_s3 }
  0x92   :  { %p283_p11 = pnand %p281_p10, %p278_p9 }
  0x94   :  { %286 = shalt.err (!%p283_p11)
}
  0x95   :  { %181 = dma.vmem_to_hbm [thread:$0]  %s179_s13, 128, %s364_s3, [#allocation5]  }
  0x96   :  { %291 = dma.done.wait [#allocation5], 128  }
  0x97   :  { %292 = vsyncadd [#allocation5], 4294967168 }
  0x98   :  { %185 = vsyncpa [#allocation4], 1 }
  0x99   :  { %186 = vsyncpa [#allocation7], 1 }
  0x9a   :  { %187 = vsyncpa [#allocation5], 1 }

</bundles_post_ra>
